<compile_context>
chip_gen: v7x
topology: tpu7x:2x2x1
jax: 0.10.0
libtpu: 0.0.40
codegen_flags: <defaults>
</compile_context>

<pallas_src>
import functools

import jax
import jax.numpy as jnp
from jax import lax
from jax.experimental import pallas as pl
from jax.experimental.pallas import tpu as pltpu

ALPHA = 1.0
GAMMA = 2.0

_LANES = 128
_SUBLANES = 8
_MAX_TM = 2048  # rows per block: 2048*128*4B = 1 MiB per input block


def _cdiv(a, b):
    return -(-a // b)


def _round_up(v, m):
    return ((v + m - 1) // m) * m


def _focal_terms(x, t, alpha, gamma):
    """Elementwise focal loss in f32: alpha * (1 - pt)**gamma * BCE(x, t)."""
    x = x.astype(jnp.float32)
    t = t.astype(jnp.float32)
    # Numerically-stable BCE-with-logits (matches PyTorch):
    #   max(x, 0) - x*t + log(1 + exp(-|x|))
    bce = jnp.maximum(x, 0.0) - x * t + jnp.log1p(jnp.exp(-jnp.abs(x)))
    pt = jnp.exp(-bce)
    one_minus_pt = 1.0 - pt
    g = float(gamma)
    if g == int(g) and int(g) >= 0:
        gi = int(g)
        if gi == 0:
            mod = jnp.ones_like(bce)
        else:
            mod = one_minus_pt
            for _ in range(gi - 1):      # gamma=2 -> one extra VALU multiply
                mod = mod * one_minus_pt
    else:
        mod = one_minus_pt ** g          # non-integer gamma: genuine pow
    return alpha * mod * bce


def _focal_sum_kernel(x_ref, t_ref, out_ref, *, alpha, gamma, tm, n_elem, cover):
    p = pl.program_id(0)   # chunk (parallel)
    i = pl.program_id(1)   # block within chunk (arbitrary / reduction)

    @pl.when(i == 0)
    def _():
        out_ref[...] = jnp.zeros_like(out_ref)

    fl = _focal_terms(x_ref[...], t_ref[...], alpha, gamma)

    if cover != n_elem:
        # Mask lane padding / rows past the logical end (only emitted when the
        # grid over-covers the data; static decision).
        row0 = (p * pl.num_programs(1) + i) * tm
        row_ids = row0 + lax.broadcasted_iota(jnp.int32, (tm, _LANES), 0)
        lane_ids = lax.broadcasted_iota(jnp.int32, (tm, _LANES), 1)
        full_rows = n_elem // _LANES
        rem = n_elem % _LANES
        mask = (row_ids < full_rows) | ((row_ids == full_rows) & (lane_ids < rem))
        fl = jnp.where(mask, fl, 0.0)

    # Per-vreg partial sums (VALU only); cross-lane reduce deferred to wrapper.
    out_ref[0] += fl.reshape(tm // _SUBLANES, _SUBLANES, _LANES).sum(axis=0)


def _focal_map_kernel(x_ref, t_ref, out_ref, *, alpha, gamma):
    out_ref[...] = _focal_terms(x_ref[...], t_ref[...], alpha, gamma).astype(
        out_ref.dtype)


def focal_loss(inputs, targets, alpha=ALPHA, gamma=GAMMA, reduce=True):
    """Focal loss with logits. `inputs`/`targets` share an arbitrary shape."""
    assert inputs.shape == targets.shape
    orig_shape = inputs.shape
    orig_dtype = inputs.dtype
    n_elem = int(inputs.size)

    # Flatten to a lane-dense (m, 128) slab. Inputs stay in their native dtype
    # (f32 cast happens inside the kernel), so HBM traffic is minimal.
    flat_x = inputs.reshape(-1)
    flat_t = targets.reshape(-1)
    pad = (-n_elem) % _LANES
    if pad:
        # Rare path: only needed so the flat view can be reshaped to (m, 128).
        # Pad values are masked inside the kernel, so anything works.
        flat_x = jnp.pad(flat_x, (0, pad))
        flat_t = jnp.pad(flat_t, (0, pad))
    m = flat_x.shape[0] // _LANES
    x2 = flat_x.reshape(m, _LANES)
    t2 = flat_t.reshape(m, _LANES)

    tm = min(_MAX_TM, _round_up(m, _SUBLANES))   # always a multiple of 8
    num_blocks = _cdiv(m, tm)

    if not reduce:
        kernel = functools.partial(
            _focal_map_kernel, alpha=float(alpha), gamma=float(gamma))
        out2 = pl.pallas_call(
            kernel,
            out_shape=jax.ShapeDtypeStruct((m, _LANES), jnp.float32),
            grid_spec=pltpu.PrefetchScalarGridSpec(
                num_scalar_prefetch=0,
                grid=(num_blocks,),
                in_specs=[pl.BlockSpec((tm, _LANES), lambda i: (i, 0)),
                          pl.BlockSpec((tm, _LANES), lambda i: (i, 0))],
                out_specs=pl.BlockSpec((tm, _LANES), lambda i: (i, 0)),
            ),
            compiler_params=pltpu.CompilerParams(
                dimension_semantics=("parallel",)),
        )(x2, t2)
        return (out2.reshape(-1)[:n_elem]
                .reshape(orig_shape).astype(orig_dtype))

    # reduce=True: streaming sum. Leading "parallel" axis splits the stream
    # into (up to) 2 chunks so v7x's two TensorCores each take one; the inner
    # "arbitrary" axis is the reduction over row-blocks of a chunk.
    num_chunks = 2 if num_blocks >= 2 else 1
    bpc = _cdiv(num_blocks, num_chunks)          # blocks per chunk
    cover = num_chunks * bpc * tm * _LANES       # elements the grid covers

    def in_idx(p, i):
        b = p * bpc + i
        # Clamp fully out-of-range blocks (their contribution is masked to 0).
        return (jnp.minimum(b, num_blocks - 1), 0)

    kernel = functools.partial(
        _focal_sum_kernel, alpha=float(alpha), gamma=float(gamma),
        tm=tm, n_elem=n_elem, cover=cover)

    partials = pl.pallas_call(
        kernel,
        out_shape=jax.ShapeDtypeStruct((num_chunks, _SUBLANES, _LANES),
                                       jnp.float32),
        grid_spec=pltpu.PrefetchScalarGridSpec(
            num_scalar_prefetch=0,
            grid=(num_chunks, bpc),
            in_specs=[pl.BlockSpec((tm, _LANES), in_idx),
                      pl.BlockSpec((tm, _LANES), in_idx)],
            out_specs=pl.BlockSpec((1, _SUBLANES, _LANES),
                                   lambda p, i: (p, 0, 0)),
        ),
        compiler_params=pltpu.CompilerParams(
            dimension_semantics=("parallel", "arbitrary")),
    )(x2, t2)

    total = jnp.sum(partials, dtype=jnp.float32)
    return total / jnp.float32(n_elem)


# ----------------------------- pure-JAX reference ---------------------------

def _focal_map_ref(x, t, alpha=ALPHA, gamma=GAMMA):
    x = x.astype(jnp.float32)
    t = t.astype(jnp.float32)
    bce = jnp.maximum(x, 0.0) - x * t + jnp.log1p(jnp.exp(-jnp.abs(x)))
    pt = jnp.exp(-bce)
    return alpha * (1.0 - pt) ** gamma * bce


def _focal_loss_ref(x, t, alpha=ALPHA, gamma=GAMMA):
    return jnp.mean(_focal_map_ref(x, t, alpha, gamma))


if __name__ == "__main__":
    key = jax.random.PRNGKey(0)
    k1, k2 = jax.random.split(key)

    # Main NCHW example consistent with the module: batch=2, channels=4, 16x16.
    x = jax.random.normal(k1, (2, 4, 16, 16), dtype=jnp.float32)
    t = (jax.random.uniform(k2, (2, 4, 16, 16)) > 0.5).astype(jnp.float32)

    out = jax.block_until_ready(focal_loss(x, t))
    ref = _focal_loss_ref(x, t)
    assert jnp.allclose(out, ref, rtol=1e-5, atol=1e-6), (out, ref)

    # reduce=False path (per-element focal loss, PyTorch semantics).
    out_map = jax.block_until_ready(focal_loss(x, t, reduce=False))
    ref_map = _focal_map_ref(x, t)
    assert out_map.shape == x.shape
    assert jnp.allclose(out_map, ref_map, rtol=1e-5, atol=1e-6)

    # Tail / masking path: element count not a multiple of 128.
    k3, k4 = jax.random.split(k1)
    xa = jax.random.normal(k3, (3, 5, 7, 9), dtype=jnp.float32)
    ta = (jax.random.uniform(k4, (3, 5, 7, 9)) > 0.5).astype(jnp.float32)
    outa = jax.block_until_ready(focal_loss(xa, ta))
    assert jnp.allclose(outa, _focal_loss_ref(xa, ta), rtol=1e-5, atol=1e-6)

    # Multi-block / two-chunk path (odd block count -> exercises clamp+mask).
    k5, k6 = jax.random.split(k2)
    xb = jax.random.normal(k5, (6, 8, 128, 128), dtype=jnp.float32)
    tb = (jax.random.uniform(k6, (6, 8, 128, 128)) > 0.5).astype(jnp.float32)
    outb = jax.block_until_ready(focal_loss(xb, tb))
    assert jnp.allclose(outb, _focal_loss_ref(xb, tb), rtol=1e-5, atol=1e-6)

    print("KERNEL_OK")
</pallas_src>

<mosaic_0001>
module attributes {stable_mosaic.version = 11 : i64} {
  func.func @_focal_sum_kernel(%arg0: i32, %arg1: i32, %arg2: memref<16x128xf32, #tpu.memory_space<vmem>>, %arg3: memref<16x128xf32, #tpu.memory_space<vmem>>, %arg4: memref<1x8x128xf32, #tpu.memory_space<vmem>>) attributes {dimension_semantics = [#tpu.dimension_semantics<parallel>, #tpu.dimension_semantics<arbitrary>], iteration_bounds = array<i64: 1, 1>, scalar_prefetch = 0 : i64, scratch_operands = 0 : i64, tpu.core_type = #tpu.core_type<tc>, window_params = [{transform_indices = @transform_0, window_bounds = array<i64: 16, 128>}, {transform_indices = @transform_1, window_bounds = array<i64: 16, 128>}, {transform_indices = @transform_2, window_bounds = array<i64: 1, 8, 128>}]} {
    %c0_i32 = arith.constant 0 : i32
    %0 = arith.cmpi eq, %arg1, %c0_i32 : i32
    %1 = arith.extui %0 : i1 to i32
    %c0_i32_0 = arith.constant 0 : i32
    %2 = arith.cmpi ne, %1, %c0_i32_0 : i32
    scf.if %2 {
      %cst_15 = arith.constant 0.000000e+00 : f32
      %32 = vector.broadcast %cst_15 : f32 to vector<1x8x128xf32>
      %c0_16 = arith.constant 0 : index
      %c0_17 = arith.constant 0 : index
      %c0_18 = arith.constant 0 : index
      %33 = vector.load %arg4[%c0_16, %c0_17, %c0_18] : memref<1x8x128xf32, #tpu.memory_space<vmem>>, vector<1x8x128xf32>
      tpu.vector_store %arg4[%c0_16, %c0_17, %c0_18], %32 {strides = array<i32>} : memref<1x8x128xf32, #tpu.memory_space<vmem>>, vector<1x8x128xf32>,
    } else {
    }
    %c0 = arith.constant 0 : index
    %c0_1 = arith.constant 0 : index
    %3 = vector.load %arg2[%c0, %c0_1] : memref<16x128xf32, #tpu.memory_space<vmem>>, vector<16x128xf32>
    %c0_2 = arith.constant 0 : index
    %c0_3 = arith.constant 0 : index
    %4 = vector.load %arg3[%c0_2, %c0_3] : memref<16x128xf32, #tpu.memory_space<vmem>>, vector<16x128xf32>
    %cst = arith.constant 0.000000e+00 : f32
    %5 = vector.broadcast %cst : f32 to vector<16x128xf32>
    %6 = arith.maximumf %3, %5 : vector<16x128xf32>
    %7 = arith.mulf %3, %4 : vector<16x128xf32>
    %8 = arith.subf %6, %7 : vector<16x128xf32>
    %9 = math.absf %3 : vector<16x128xf32>
    %cst_4 = arith.constant 0.000000e+00 : f32
    %10 = vector.broadcast %cst_4 : f32 to vector<16x128xf32>
    %11 = arith.subf %10, %9 : vector<16x128xf32>
    %12 = math.exp %11 : vector<16x128xf32>
    %13 = math.log1p %12 : vector<16x128xf32>
    %14 = arith.addf %8, %13 : vector<16x128xf32>
    %cst_5 = arith.constant 0.000000e+00 : f32
    %15 = vector.broadcast %cst_5 : f32 to vector<16x128xf32>
    %16 = arith.subf %15, %14 : vector<16x128xf32>
    %17 = math.exp %16 : vector<16x128xf32>
    %cst_6 = arith.constant 1.000000e+00 : f32
    %18 = vector.broadcast %cst_6 : f32 to vector<16x128xf32>
    %19 = arith.subf %18, %17 : vector<16x128xf32>
    %20 = arith.mulf %19, %19 : vector<16x128xf32>
    %cst_7 = arith.constant 1.000000e+00 : f32
    %21 = vector.broadcast %cst_7 : f32 to vector<16x128xf32>
    %22 = arith.mulf %21, %20 : vector<16x128xf32>
    %23 = arith.mulf %22, %14 : vector<16x128xf32>
    %c0_8 = arith.constant 0 : index
    %c0_9 = arith.constant 0 : index
    %c0_10 = arith.constant 0 : index
    %24 = vector.load %arg4[%c0_8, %c0_9, %c0_10] : memref<1x8x128xf32, #tpu.memory_space<vmem>>, vector<1x8x128xf32>
    %25 = vector.shape_cast %24 : vector<1x8x128xf32> to vector<8x128xf32>
    %26 = vector.shape_cast %23 : vector<16x128xf32> to vector<2x8x128xf32>
    %cst_11 = arith.constant dense<0.000000e+00> : vector<8x128xf32>
    %27 = vector.multi_reduction <add>, %26, %cst_11 [0] : vector<2x8x128xf32> to vector<8x128xf32>
    %28 = arith.addf %25, %27 : vector<8x128xf32>
    %c0_12 = arith.constant 0 : index
    %c0_13 = arith.constant 0 : index
    %c0_14 = arith.constant 0 : index
    %29 = vector.load %arg4[%c0_12, %c0_13, %c0_14] : memref<1x8x128xf32, #tpu.memory_space<vmem>>, vector<1x8x128xf32>
    %30 = vector.shape_cast %29 : vector<1x8x128xf32> to vector<8x128xf32>
    %31 = vector.shape_cast %28 : vector<8x128xf32> to vector<1x8x128xf32>
    tpu.vector_store %arg4[%c0_12, %c0_13, %c0_14], %31 {strides = array<i32>} : memref<1x8x128xf32, #tpu.memory_space<vmem>>, vector<1x8x128xf32>,
    return
  }
  func.func @transform_0(%arg0: i32, %arg1: i32) -> (i32, i32) {
    %c1_i32 = arith.constant 1 : i32
    %0 = arith.muli %arg0, %c1_i32 : i32
    %1 = arith.addi %0, %arg1 : i32
    %c0_i32 = arith.constant 0 : i32
    %2 = arith.minsi %1, %c0_i32 : i32
    %c0_i32_0 = arith.constant 0 : i32
    %c0_i32_1 = arith.constant 0 : i32
    return %2, %c0_i32_0 : i32, i32
  }
  func.func @transform_1(%arg0: i32, %arg1: i32) -> (i32, i32) {
    %c1_i32 = arith.constant 1 : i32
    %0 = arith.muli %arg0, %c1_i32 : i32
    %1 = arith.addi %0, %arg1 : i32
    %c0_i32 = arith.constant 0 : i32
    %2 = arith.minsi %1, %c0_i32 : i32
    %c0_i32_0 = arith.constant 0 : i32
    %c0_i32_1 = arith.constant 0 : i32
    return %2, %c0_i32_0 : i32, i32
  }
  func.func @transform_2(%arg0: i32, %arg1: i32) -> (i32, i32, i32) {
    %c0_i32 = arith.constant 0 : i32
    %c0_i32_0 = arith.constant 0 : i32
    %c0_i32_1 = arith.constant 0 : i32
    return %arg0, %c0_i32, %c0_i32_0 : i32, i32, i32
  }
}

</mosaic_0001>

<bundles_post_ra>
// kernel: tpu_custom_call.1
= control target key start
LH: loop header
LB: loop body
LE: loop exit
PB: predicated region body
PF: predicated region fallthrough
CT: control target
= control target key end

     0   :  { %7 = vsyncpa [#allocation3], 0  ;;  %s285_s0 = inlined_call_operand.hbm [shape: f32[16,128], index: 0, kind: input, shape index: {}]   ;;  %s286_s1 = inlined_call_operand.hbm [shape: f32[16,128], index: 1, kind: input, shape index: {}]   ;;  %s287_s2 = inlined_call_operand.hbm [shape: f32[1,8,128], index: 2, kind: output, shape index: {}]  }
   0x1   :  { %8 = vsyncpa [#allocation6], 0 }
   0x2   :  { %9 = vsyncpa [#allocation4], 0  ;;  %s229_s9 = smov [#allocation2]   ;;  %s157_s13 = scalar_lea.hbm %s285_s0, 256 }
   0x3   :  { %s21_s10 = sshll.u32 %s229_s9, 4  ;;  %p158_p0 = scmp.ne.s32.totalorder %s285_s0, %s157_s13  ;;  %s22_s10 = int_to_ptr.vmem [resolvable:$true] %s21_s10 }
   0x4   :  { %p161_p1 = scmp.lt.u32.totalorder %s157_s13, %s285_s0 }
   0x6   :  { %p163_p2 = pnand %p161_p1, %p158_p0 }
   0x8   :  { %166 = shalt.err (!%p163_p2)
}
   0x9   :  { %s167_s18 = scalar_lea.vmem %s22_s10, 256  ;;  %p172_p4 = scmp.lt.s32.totalorder %s22_s10, %s22_s10 }
   0xa   :  { %p168_p3 = scmp.ne.s32.totalorder %s22_s10, %s167_s18  ;;  %p173_p5 = scmp.lt.s32.totalorder %s167_s18, %s167_s18 }
   0xc   :  { %p174_p6 = por %p173_p5, %p172_p4 }
   0xe   :  { %p175_p7 = pnand %p174_p6, %p168_p3 }
  0x10   :  { %178 = shalt.err (!%p175_p7)
}
  0x11   :  { %s230_s19 = smov 128   ;;  %s231_s20 = smov 8  }
  0x12   :  { %27 = dma.hbm_to_vmem [thread:$0]  %s285_s0, 256, %s22_s10, [#allocation3], %s230_s19, %s230_s19, %s231_s20  }
  0x13   :  { %s232_s23 = smov [#allocation5]   ;;  %s179_s27 = scalar_lea.hbm %s286_s1, 256 }
  0x14   :  { %s39_s24 = sshll.u32 %s232_s23, 4  ;;  %p180_p8 = scmp.ne.s32.totalorder %s286_s1, %s179_s27  ;;  %s40_s24 = int_to_ptr.vmem [resolvable:$true] %s39_s24 }
  0x15   :  { %p183_p9 = scmp.lt.u32.totalorder %s179_s27, %s286_s1 }
  0x17   :  { %p185_p10 = pnand %p183_p9, %p180_p8 }
  0x19   :  { %188 = shalt.err (!%p185_p10)
}
  0x1a   :  { %s189_s4 = scalar_lea.vmem %s40_s24, 256  ;;  %p194_p12 = scmp.lt.s32.totalorder %s40_s24, %s40_s24 }
  0x1b   :  { %p190_p11 = scmp.ne.s32.totalorder %s40_s24, %s189_s4  ;;  %p195_p13 = scmp.lt.s32.totalorder %s189_s4, %s189_s4 }
  0x1d   :  { %p196_p0 = por %p195_p13, %p194_p12 }
  0x1f   :  { %p197_p1 = pnand %p196_p0, %p190_p11 }
  0x21   :  { %200 = shalt.err (!%p197_p1)
}
  0x22   :  { %45 = dma.hbm_to_vmem [thread:$0]  %s286_s1, 256, %s40_s24, [#allocation6], %s230_s19, %s230_s19, %s231_s20  }
  0x23   :  { %223 = dma.done.wait [#allocation3], 256  }
  0x24   :  { %224 = vsyncadd [#allocation3], 4294967040 }
  0x25   :  { %225 = dma.done.wait [#allocation6], 256  }
  0x26   :  { %226 = vsyncadd [#allocation6], 4294967040  ;;  %v65_v0 = vld [vmem:[#allocation2] sm:$0xff]  ;;  %v66_v1 = vld [vmem:[#allocation2 + $0x8] sm:$0xff]  ;;  %s233_s1 = smov [#allocation7]  }
  0x27   :  { %v75_v2 = vand.u32 2147483647, %v65_v0  ;;  %v76_v3 = vand.u32 2147483647, %v66_v1  ;;  %v67_v14 = vld [vmem:[#allocation5] sm:$0xff]  ;;  %v68_v15 = vld [vmem:[#allocation5 + $0x8] sm:$0xff] }
  0x28   :  { %v69_v17 = vmax.f32 %v65_v0, 0.0  ;;  %v71_v18 = vmul.f32 %v67_v14, %v65_v0  ;;  %v70_v21 = vmax.f32 %v66_v1, 0.0  ;;  %v72_v22 = vmul.f32 %v68_v15, %v66_v1  ;;  %s125_s6 = sshll.u32 %s233_s1, 4  ;;  %s126_s6 = int_to_ptr.vmem [resolvable:$true] %s125_s6 }
  0x29   :  { %v77_v4 = vsub.f32 0.0, %v75_v2  ;;  %v78_v5 = vsub.f32 0.0, %v76_v3  ;;  %s201_s7 = scalar_lea.vmem %s126_s6, 128  ;;  %p206_p3 = scmp.lt.s32.totalorder %s126_s6, %s126_s6 }
  0x2a   :  { %v73_v26 = vsub.f32 %v69_v17, %v71_v18  ;;  %v74_v29 = vsub.f32 %v70_v21, %v72_v22  ;;  %p202_p2 = scmp.ne.s32.totalorder %s126_s6, %s201_s7  ;;  %p207_p4 = scmp.lt.s32.totalorder %s201_s7, %s201_s7 }
  0x2b   :  { %v79_v6 = vmul.f32 1.442695, %v77_v4  ;;  %v81_v7 = vmul.f32 1.442695, %v78_v5 }
  0x2c   :  { %p208_p5 = por %p207_p4, %p206_p3 }
  0x2d   :  { %145 = vpow2.f32 %v79_v6 }
  0x2e   :  { %147 = vpow2.f32 %v81_v7  ;;  %p209_p6 = pnand %p208_p5, %p202_p2 }
  0x37   :  { %v146_v8 = vpop.eup %145 }
  0x38   :  { %v148_v9 = vpop.eup %147  ;;  %v83_v10 = vadd.f32 1.0, %v146_v8  ;;  %v86_v12 = vmul.f32 -0.5, %v146_v8  ;;  %v89_v19 = vand.u32 2147483647, %v146_v8 }
  0x39   :  { %v92_v11 = vadd.f32 1.0, %v148_v9  ;;  %v95_v13 = vmul.f32 -0.5, %v148_v9  ;;  %v98_v23 = vand.u32 2147483647, %v148_v9 }
  0x3a   :  { %149 = vlog2.f32 %v83_v10  ;;  %v87_v16 = vadd.f32 1.0, %v86_v12  ;;  %vm90_vm0 = vcmp.lt.f32.partialorder %v89_v19, 0.0004427343 }
  0x3b   :  { %151 = vlog2.f32 %v92_v11  ;;  %v96_v20 = vadd.f32 1.0, %v95_v13  ;;  %vm99_vm1 = vcmp.lt.f32.partialorder %v98_v23, 0.0004427343 }
  0x3c   :  { %v88_v24 = vmul.f32 %v146_v8, %v87_v16 }
  0x3d   :  { %v97_v27 = vmul.f32 %v148_v9, %v96_v20 }
  0x44   :  { %v150_v25 = vpop.eup %149 }
  0x45   :  { %v152_v28 = vpop.eup %151  ;;  %v85_v30 = vmul.f32 0.6931472, %v150_v25 }
  0x46   :  { %v94_v31 = vmul.f32 0.6931472, %v152_v28 }
  0x47   :  { %v91_v32 = vsel %vm90_vm0, %v88_v24, %v85_v30 }
  0x48   :  { %v100_v33 = vsel %vm99_vm1, %v97_v27, %v94_v31  ;;  %v101_v34 = vadd.f32 %v91_v32, %v73_v26 }
  0x49   :  { %v102_v35 = vadd.f32 %v100_v33, %v74_v29 }
  0x4a   :  { %v103_v36 = vsub.f32 0.0, %v101_v34 }
  0x4b   :  { %v104_v37 = vsub.f32 0.0, %v102_v35 }
  0x4c   :  { %v105_v38 = vmul.f32 1.442695, %v103_v36 }
  0x4d   :  { %v107_v39 = vmul.f32 1.442695, %v104_v37 }
  0x4e   :  { %153 = vpow2.f32 %v105_v38 }
  0x4f   :  { %155 = vpow2.f32 %v107_v39 }
  0x58   :  { %v154_v40 = vpop.eup %153 }
  0x59   :  { %v156_v41 = vpop.eup %155  ;;  %v109_v42 = vsub.f32 1.0, %v154_v40 }
  0x5a   :  { %v110_v43 = vsub.f32 1.0, %v156_v41 }
  0x5b   :  { %v111_v44 = vmul.f32 %v109_v42, %v109_v42 }
  0x5c   :  { %v112_v45 = vmul.f32 %v110_v43, %v110_v43 }
  0x5d   :  { %v113_v46 = vmul.f32 %v111_v44, %v101_v34 }
  0x5e   :  { %v114_v47 = vmul.f32 %v112_v45, %v102_v35 }
  0x60   :  { %v116_v48 = vadd.f32 %v114_v47, %v113_v46 }
  0x62   :  { %118 = vst [vmem:[#allocation7] sm:$0xff] %v116_v48 }
  0x63   :  { %212 = shalt.err (!%p209_p6)
}
  0x64   :  { %s213_s10 = scalar_lea.hbm %s287_s2, 128 }
  0x65   :  { %p214_p7 = scmp.ne.s32.totalorder %s287_s2, %s213_s10  ;;  %p217_p8 = scmp.lt.u32.totalorder %s213_s10, %s287_s2 }
  0x67   :  { %p219_p9 = pnand %p217_p8, %p214_p7 }
  0x69   :  { %222 = shalt.err (!%p219_p9)
}
  0x6a   :  { %128 = dma.vmem_to_hbm [thread:$0]  %s126_s6, 128, %s287_s2, [#allocation4]  }
  0x6b   :  { %227 = dma.done.wait [#allocation4], 128  }
  0x6c   :  { %228 = vsyncadd [#allocation4], 4294967168 }
  0x6d   :  { %132 = vsyncpa [#allocation3], 1 }
  0x6e   :  { %133 = vsyncpa [#allocation6], 1 }
  0x6f   :  { %134 = vsyncpa [#allocation4], 1 }

</bundles_post_ra>
